<compile_context>
chip_gen: v7x
topology: tpu7x:2x2x1
jax: 0.10.0
libtpu: 0.0.40
codegen_flags: <defaults>
</compile_context>

<pallas_src>
import functools

import jax
import jax.numpy as jnp
from jax.experimental import pallas as pl
from jax.experimental.pallas import tpu as pltpu


_VMEM_LIMIT = 48 * 1024 * 1024


def _pick_tile(n, max_tile):
    """Largest tile <= max_tile that divides n and is a multiple of 8 (TPU
    sublane granularity), falling back to the full extent."""
    if n <= max_tile:
        return n
    for t in range(max_tile, 7, -1):
        if n % t == 0 and t % 8 == 0:
            return t
    return n


def _layernorm_f32(x, gamma, beta, eps):
    """PyTorch LayerNorm semantics: biased variance, eps inside rsqrt, f32."""
    mu = jnp.mean(x, axis=-1, keepdims=True)
    var = jnp.mean(jnp.square(x - mu), axis=-1, keepdims=True)
    return (x - mu) * jax.lax.rsqrt(var + eps) * gamma + beta


# ---------------------------------------------------------------------------
# Small-sequence path: one fully fused kernel, grid = (B, heads).
# ---------------------------------------------------------------------------
def fused_attention_kernel(x_ref, g_ref, b_ref, wq_ref, wk_ref, wv_ref,
                           wo_ref, bo_ref, o_ref, xn_sc, acc_sc, *, eps):
    h = pl.program_id(1)

    @pl.when(h == 0)
    def _init():
        xn = _layernorm_f32(x_ref[0].astype(jnp.float32),
                            g_ref[...], b_ref[...], eps)
        xn_sc[...] = xn.astype(xn_sc.dtype)                 # bf16 MXU operand
        acc_sc[...] = jnp.zeros(acc_sc.shape, acc_sc.dtype)

    xn = xn_sc[...]                                          # (N, D) bf16
    # Per-head projections (softmax scale already folded into wq host-side).
    q = jnp.dot(xn, wq_ref[0], preferred_element_type=jnp.float32)   # (N, dh)
    k = jnp.dot(xn, wk_ref[0], preferred_element_type=jnp.float32)
    v = jnp.dot(xn, wv_ref[0], preferred_element_type=jnp.float32)

    # scores = q . k^T via dot_general contracting last dims (no transpose/XLU).
    s = jax.lax.dot_general(q, k, (((1,), (1,)), ((), ())),
                            preferred_element_type=jnp.float32)       # (N, N)
    m = jnp.max(s, axis=-1, keepdims=True)
    p = jnp.exp(s - m)
    p = p * pl.reciprocal(jnp.sum(p, axis=-1, keepdims=True), approx=True)
    # TODO(synk): dropout is identity here (p = 0.0 / eval); no RNG masking emitted.
    out_h = jnp.dot(p.astype(jnp.bfloat16), v.astype(jnp.bfloat16),
                    preferred_element_type=jnp.float32)               # (N, dh)

    # Per-head partial output projection accumulated in f32 (no lane concat).
    acc_sc[...] += jnp.dot(out_h.astype(jnp.bfloat16), wo_ref[0],
                           preferred_element_type=jnp.float32)        # (N, D)

    @pl.when(h == pl.num_programs(1) - 1)
    def _finalize():
        o_ref[0] = (acc_sc[...] + bo_ref[...]).astype(o_ref.dtype)


# ---------------------------------------------------------------------------
# Tiled path, kernel A: LayerNorm + per-head QKV projection.
# grid = (B*N // tm, heads); heads innermost ('arbitrary'), LN cached at h==0.
# ---------------------------------------------------------------------------
def ln_qkv_kernel(x_ref, g_ref, b_ref, wq_ref, wk_ref, wv_ref,
                  q_ref, k_ref, v_ref, xn_sc, *, eps):
    @pl.when(pl.program_id(1) == 0)
    def _():
        xn = _layernorm_f32(x_ref[...].astype(jnp.float32),
                            g_ref[...], b_ref[...], eps)
        xn_sc[...] = xn.astype(xn_sc.dtype)

    xn = xn_sc[...]                                          # (tm, D) bf16
    # Three narrow per-head matmuls keep the output head-major with zero lane
    # slicing.  TODO(synk): for dim_head >= 128 a single fused (D, 3*dh) matmul
    # would be lane-denser on the store path (v5e single store slot).
    q_ref[0] = jnp.dot(xn, wq_ref[0],
                       preferred_element_type=jnp.float32).astype(q_ref.dtype)
    k_ref[0] = jnp.dot(xn, wk_ref[0],
                       preferred_element_type=jnp.float32).astype(k_ref.dtype)
    v_ref[0] = jnp.dot(xn, wv_ref[0],
                       preferred_element_type=jnp.float32).astype(v_ref.dtype)


# ---------------------------------------------------------------------------
# Tiled path, kernel B: attention per (batch, head), K/V fully VMEM-resident.
# grid = (B, heads, N // tq); q axis innermost so K/V never re-streams.
# ---------------------------------------------------------------------------
def attention_head_kernel(q_ref, k_ref, v_ref, o_ref):
    q = q_ref[0, 0]                                          # (tq, dh) bf16
    k = k_ref[0, 0]                                          # (N,  dh) bf16
    v = v_ref[0, 0]                                          # (N,  dh) bf16
    s = jax.lax.dot_general(q, k, (((1,), (1,)), ((), ())),
                            preferred_element_type=jnp.float32)       # (tq, N)
    m = jnp.max(s, axis=-1, keepdims=True)
    p = jnp.exp(s - m)
    p = p * pl.reciprocal(jnp.sum(p, axis=-1, keepdims=True), approx=True)
    # TODO(synk): dropout is identity (p = 0.0 / eval).
    # TODO(synk): for very large N, switch to an in-kernel fori_loop online
    # softmax over kv chunks to bound the (tq, N) score temporary.
    o_ref[0, 0] = jnp.dot(p.astype(v.dtype), v,
                          preferred_element_type=jnp.float32).astype(o_ref.dtype)


# ---------------------------------------------------------------------------
# Tiled path, kernel C: output projection as per-head partials + bias.
# grid = (B*N // tm, heads); heads innermost ('arbitrary').
# ---------------------------------------------------------------------------
def out_proj_kernel(a_ref, wo_ref, bo_ref, o_ref, acc_sc):
    h = pl.program_id(1)

    @pl.when(h == 0)
    def _():
        acc_sc[...] = jnp.zeros(acc_sc.shape, acc_sc.dtype)

    acc_sc[...] += jnp.dot(a_ref[0], wo_ref[0],
                           preferred_element_type=jnp.float32)        # (tm, D)

    @pl.when(h == pl.num_programs(1) - 1)
    def _():
        o_ref[...] = (acc_sc[...] + bo_ref[...]).astype(o_ref.dtype)


def attention_forward(x, gamma, beta, w_qkv, w_out, b_out, *, heads, dim_head,
                      row_tile=512, q_tile=256, fused_seq_threshold=128):
    B, N, D = x.shape
    inner = heads * dim_head
    scale = float(dim_head) ** -0.5
    eps = 1e-5

    # Host-side (traced once) weight prep: split per head, fold softmax scale
    # into wq, reshape w_out for per-head partial projections, cast to bf16.
    def per_head(w):                                         # (D, inner) -> (heads, D, dh)
        return jnp.transpose(w.reshape(D, heads, dim_head),
                             (1, 0, 2)).astype(jnp.bfloat16)

    wq = per_head(w_qkv[:, 0 * inner:1 * inner] * scale)
    wk = per_head(w_qkv[:, 1 * inner:2 * inner])
    wv = per_head(w_qkv[:, 2 * inner:3 * inner])
    wo = w_out.reshape(heads, dim_head, D).astype(jnp.bfloat16)

    if N <= fused_seq_threshold:
        # ---- small path: single fused kernel, everything VMEM-resident ----
        return pl.pallas_call(
            functools.partial(fused_attention_kernel, eps=eps),
            out_shape=jax.ShapeDtypeStruct((B, N, D), x.dtype),
            grid_spec=pltpu.PrefetchScalarGridSpec(
                num_scalar_prefetch=0,
                grid=(B, heads),
                in_specs=[
                    pl.BlockSpec((1, N, D), lambda b, h: (b, 0, 0)),         # x
                    pl.BlockSpec((1, D), lambda b, h: (0, 0)),               # gamma
                    pl.BlockSpec((1, D), lambda b, h: (0, 0)),               # beta
                    pl.BlockSpec((1, D, dim_head), lambda b, h: (h, 0, 0)),  # wq (scaled)
                    pl.BlockSpec((1, D, dim_head), lambda b, h: (h, 0, 0)),  # wk
                    pl.BlockSpec((1, D, dim_head), lambda b, h: (h, 0, 0)),  # wv
                    pl.BlockSpec((1, dim_head, D), lambda b, h: (h, 0, 0)),  # w_out[h]
                    pl.BlockSpec((1, D), lambda b, h: (0, 0)),               # b_out
                ],
                out_specs=pl.BlockSpec((1, N, D), lambda b, h: (b, 0, 0)),
                scratch_shapes=[
                    pltpu.VMEM((N, D), jnp.bfloat16),   # cached LayerNorm(x_b)
                    pltpu.VMEM((N, D), jnp.float32),    # per-head projected accumulator
                ],
            ),
            compiler_params=pltpu.CompilerParams(
                dimension_semantics=("parallel", "arbitrary"),
                vmem_limit_bytes=_VMEM_LIMIT),
        )(x, gamma, beta, wq, wk, wv, wo, b_out)

    # ---- tiled path for longer sequences ----
    M = B * N
    tm = _pick_tile(M, row_tile)
    tq = _pick_tile(N, q_tile)

    # A) LayerNorm + per-head QKV projection, head-major output layout.
    x2 = x.reshape(M, D)
    qkv_shape = jax.ShapeDtypeStruct((heads, M, dim_head), jnp.bfloat16)
    q3, k3, v3 = pl.pallas_call(
        functools.partial(ln_qkv_kernel, eps=eps),
        out_shape=(qkv_shape, qkv_shape, qkv_shape),
        grid_spec=pltpu.PrefetchScalarGridSpec(
            num_scalar_prefetch=0,
            grid=(M // tm, heads),
            in_specs=[
                pl.BlockSpec((tm, D), lambda i, h: (i, 0)),
                pl.BlockSpec((1, D), lambda i, h: (0, 0)),
                pl.BlockSpec((1, D), lambda i, h: (0, 0)),
                pl.BlockSpec((1, D, dim_head), lambda i, h: (h, 0, 0)),
                pl.BlockSpec((1, D, dim_head), lambda i, h: (h, 0, 0)),
                pl.BlockSpec((1, D, dim_head), lambda i, h: (h, 0, 0)),
            ],
            out_specs=[
                pl.BlockSpec((1, tm, dim_head), lambda i, h: (h, i, 0)),
                pl.BlockSpec((1, tm, dim_head), lambda i, h: (h, i, 0)),
                pl.BlockSpec((1, tm, dim_head), lambda i, h: (h, i, 0)),
            ],
            scratch_shapes=[pltpu.VMEM((tm, D), jnp.bfloat16)],
        ),
        compiler_params=pltpu.CompilerParams(
            dimension_semantics=("parallel", "arbitrary"),
            vmem_limit_bytes=_VMEM_LIMIT),
    )(x2, gamma, beta, wq, wk, wv)

    # Free reshapes only (no data movement): head-major (heads, B, N, dh).
    q4 = q3.reshape(heads, B, N, dim_head)
    k4 = k3.reshape(heads, B, N, dim_head)
    v4 = v3.reshape(heads, B, N, dim_head)

    # B) attention per (batch, head); K/V resident across all q tiles.
    attn = pl.pallas_call(
        attention_head_kernel,
        out_shape=jax.ShapeDtypeStruct((heads, B, N, dim_head), jnp.bfloat16),
        grid_spec=pltpu.PrefetchScalarGridSpec(
            num_scalar_prefetch=0,
            grid=(B, heads, N // tq),
            in_specs=[
                pl.BlockSpec((1, 1, tq, dim_head), lambda b, h, qi: (h, b, qi, 0)),
                pl.BlockSpec((1, 1, N, dim_head), lambda b, h, qi: (h, b, 0, 0)),
                pl.BlockSpec((1, 1, N, dim_head), lambda b, h, qi: (h, b, 0, 0)),
            ],
            out_specs=pl.BlockSpec((1, 1, tq, dim_head),
                                   lambda b, h, qi: (h, b, qi, 0)),
        ),
        compiler_params=pltpu.CompilerParams(
            dimension_semantics=("parallel", "parallel", "arbitrary"),
            vmem_limit_bytes=_VMEM_LIMIT),
    )(q4, k4, v4)

    # C) output projection: sum_h attn_h @ w_out[h] + bias, lane-dense store.
    out2 = pl.pallas_call(
        out_proj_kernel,
        out_shape=jax.ShapeDtypeStruct((M, D), x.dtype),
        grid_spec=pltpu.PrefetchScalarGridSpec(
            num_scalar_prefetch=0,
            grid=(M // tm, heads),
            in_specs=[
                pl.BlockSpec((1, tm, dim_head), lambda i, h: (h, i, 0)),
                pl.BlockSpec((1, dim_head, D), lambda i, h: (h, 0, 0)),
                pl.BlockSpec((1, D), lambda i, h: (0, 0)),
            ],
            out_specs=pl.BlockSpec((tm, D), lambda i, h: (i, 0)),
            scratch_shapes=[pltpu.VMEM((tm, D), jnp.float32)],
        ),
        compiler_params=pltpu.CompilerParams(
            dimension_semantics=("parallel", "arbitrary"),
            vmem_limit_bytes=_VMEM_LIMIT),
    )(attn.reshape(heads, M, dim_head), wo, b_out)

    return out2.reshape(B, N, D)


def attention_reference(x, gamma, beta, w_qkv, w_out, b_out, *, heads, dim_head):
    """Pure-JAX f32 reference mirroring the PyTorch forward."""
    B, N, D = x.shape
    inner = heads * dim_head
    mu = jnp.mean(x, axis=-1, keepdims=True)
    var = jnp.mean(jnp.square(x - mu), axis=-1, keepdims=True)
    xn = (x - mu) / jnp.sqrt(var + 1e-5) * gamma[0] + beta[0]
    qkv = xn @ w_qkv
    q, k, v = jnp.split(qkv, 3, axis=-1)

    def split_heads(t):  # 'b n (h d) -> b h n d'
        return t.reshape(B, N, heads, dim_head).transpose(0, 2, 1, 3)

    q, k, v = map(split_heads, (q, k, v))
    dots = jnp.einsum("bhnd,bhmd->bhnm", q, k) * (float(dim_head) ** -0.5)
    attn = jax.nn.softmax(dots, axis=-1)
    out = jnp.einsum("bhnm,bhmd->bhnd", attn, v)
    out = out.transpose(0, 2, 1, 3).reshape(B, N, inner)
    return out @ w_out + b_out[0]


if __name__ == "__main__":
    heads, dim_head, dim = 4, 16, 32
    inner = heads * dim_head

    key = jax.random.PRNGKey(0)
    k_x1, k_x2, k_g, k_b, k_qkv, k_out, k_bias = jax.random.split(key, 7)

    gamma = 1.0 + 0.1 * jax.random.normal(k_g, (1, dim), dtype=jnp.float32)
    beta = 0.1 * jax.random.normal(k_b, (1, dim), dtype=jnp.float32)
    w_qkv = 0.02 * jax.random.normal(k_qkv, (dim, 3 * inner), dtype=jnp.float32)
    w_out = 0.02 * jax.random.normal(k_out, (inner, dim), dtype=jnp.float32)
    b_out = 0.02 * jax.random.normal(k_bias, (1, dim), dtype=jnp.float32)

    fwd = jax.jit(functools.partial(attention_forward,
                                    heads=heads, dim_head=dim_head))
    ref = functools.partial(attention_reference,
                            heads=heads, dim_head=dim_head)

    # Test 1: toy module shapes -> fully fused single-kernel path.
    x1 = jax.random.normal(k_x1, (2, 8, dim), dtype=jnp.float32)
    out1 = jax.block_until_ready(fwd(x1, gamma, beta, w_qkv, w_out, b_out))
    ref1 = ref(x1, gamma, beta, w_qkv, w_out, b_out)
    assert out1.shape == x1.shape
    # Tolerance loosened vs the f32 reference: bf16 MXU operands (f32 accum)
    # and the approximate EUP reciprocal in the softmax.
    assert jnp.allclose(out1, ref1, atol=2e-2, rtol=2e-2), (
        f"fused path mismatch, max abs diff {jnp.max(jnp.abs(out1 - ref1))}")

    # Test 2: longer sequence -> tiled three-kernel path (LN+QKV / attention /
    # output projection) with head-major layout and VMEM-resident K/V.
    x2 = jax.random.normal(k_x2, (2, 512, dim), dtype=jnp.float32)
    out2 = jax.block_until_ready(fwd(x2, gamma, beta, w_qkv, w_out, b_out))
    ref2 = ref(x2, gamma, beta, w_qkv, w_out, b_out)
    assert out2.shape == x2.shape
    assert jnp.allclose(out2, ref2, atol=2e-2, rtol=2e-2), (
        f"tiled path mismatch, max abs diff {jnp.max(jnp.abs(out2 - ref2))}")

    print("KERNEL_OK")
</pallas_src>

<mosaic_0001>
module attributes {stable_mosaic.version = 11 : i64} {
  func.func @fused_attention_kernel(%arg0: i32, %arg1: i32, %arg2: memref<1x8x32xf32, #tpu.memory_space<vmem>>, %arg3: memref<1x32xf32, #tpu.memory_space<vmem>>, %arg4: memref<1x32xf32, #tpu.memory_space<vmem>>, %arg5: memref<1x32x16xbf16, #tpu.memory_space<vmem>>, %arg6: memref<1x32x16xbf16, #tpu.memory_space<vmem>>, %arg7: memref<1x32x16xbf16, #tpu.memory_space<vmem>>, %arg8: memref<1x16x32xbf16, #tpu.memory_space<vmem>>, %arg9: memref<1x32xf32, #tpu.memory_space<vmem>>, %arg10: memref<1x8x32xf32, #tpu.memory_space<vmem>>, %arg11: memref<8x32xbf16, #tpu.memory_space<vmem>>, %arg12: memref<8x32xf32, #tpu.memory_space<vmem>>) attributes {dimension_semantics = [#tpu.dimension_semantics<parallel>, #tpu.dimension_semantics<arbitrary>], iteration_bounds = array<i64: 2, 4>, scalar_prefetch = 0 : i64, scratch_operands = 2 : i64, tpu.core_type = #tpu.core_type<tc>, window_params = [{transform_indices = @transform_0, window_bounds = array<i64: 1, 8, 32>}, {pipeline_mode = #tpu.pipeline_mode<synchronous>, transform_indices = @transform_1, window_bounds = array<i64: 1, 32>}, {pipeline_mode = #tpu.pipeline_mode<synchronous>, transform_indices = @transform_2, window_bounds = array<i64: 1, 32>}, {transform_indices = @transform_3, window_bounds = array<i64: 1, 32, 16>}, {transform_indices = @transform_4, window_bounds = array<i64: 1, 32, 16>}, {transform_indices = @transform_5, window_bounds = array<i64: 1, 32, 16>}, {transform_indices = @transform_6, window_bounds = array<i64: 1, 16, 32>}, {pipeline_mode = #tpu.pipeline_mode<synchronous>, transform_indices = @transform_7, window_bounds = array<i64: 1, 32>}, {transform_indices = @transform_8, window_bounds = array<i64: 1, 8, 32>}]} {
    %c0_i32 = arith.constant 0 : i32
    %0 = arith.cmpi eq, %arg1, %c0_i32 : i32
    %1 = arith.extui %0 : i1 to i32
    %c0_i32_0 = arith.constant 0 : i32
    %2 = arith.cmpi ne, %1, %c0_i32_0 : i32
    scf.if %2 {
      %c0_26 = arith.constant 0 : index
      %c0_27 = arith.constant 0 : index
      %c0_28 = arith.constant 0 : index
      %37 = vector.load %arg2[%c0_26, %c0_27, %c0_28] : memref<1x8x32xf32, #tpu.memory_space<vmem>>, vector<1x8x32xf32>
      %38 = vector.shape_cast %37 : vector<1x8x32xf32> to vector<8x32xf32>
      %c0_29 = arith.constant 0 : index
      %c0_30 = arith.constant 0 : index
      %39 = vector.load %arg3[%c0_29, %c0_30] : memref<1x32xf32, #tpu.memory_space<vmem>>, vector<1x32xf32>
      %c0_31 = arith.constant 0 : index
      %c0_32 = arith.constant 0 : index
      %40 = vector.load %arg4[%c0_31, %c0_32] : memref<1x32xf32, #tpu.memory_space<vmem>>, vector<1x32xf32>
      %cst_33 = arith.constant dense<0.000000e+00> : vector<8xf32>
      %41 = vector.multi_reduction <add>, %38, %cst_33 [1] : vector<8x32xf32> to vector<8xf32>
      %42 = vector.shape_cast %41 : vector<8xf32> to vector<8x1xf32>
      %cst_34 = arith.constant 3.200000e+01 : f32
      %43 = vector.broadcast %cst_34 : f32 to vector<8x1xf32>
      %44 = arith.divf %42, %43 : vector<8x1xf32>
      %45 = vector.broadcast %44 : vector<8x1xf32> to vector<8x32xf32>
      %46 = arith.subf %38, %45 : vector<8x32xf32>
      %47 = arith.mulf %46, %46 : vector<8x32xf32>
      %cst_35 = arith.constant dense<0.000000e+00> : vector<8xf32>
      %48 = vector.multi_reduction <add>, %47, %cst_35 [1] : vector<8x32xf32> to vector<8xf32>
      %49 = vector.shape_cast %48 : vector<8xf32> to vector<8x1xf32>
      %cst_36 = arith.constant 3.200000e+01 : f32
      %50 = vector.broadcast %cst_36 : f32 to vector<8x1xf32>
      %51 = arith.divf %49, %50 : vector<8x1xf32>
      %52 = vector.broadcast %44 : vector<8x1xf32> to vector<8x32xf32>
      %53 = arith.subf %38, %52 : vector<8x32xf32>
      %cst_37 = arith.constant 9.99999974E-6 : f32
      %54 = vector.broadcast %cst_37 : f32 to vector<8x1xf32>
      %55 = arith.addf %51, %54 : vector<8x1xf32>
      %56 = math.rsqrt %55 : vector<8x1xf32>
      %57 = vector.broadcast %56 : vector<8x1xf32> to vector<8x32xf32>
      %58 = arith.mulf %53, %57 : vector<8x32xf32>
      %59 = vector.broadcast %39 : vector<1x32xf32> to vector<8x32xf32>
      %60 = arith.mulf %58, %59 : vector<8x32xf32>
      %61 = vector.broadcast %40 : vector<1x32xf32> to vector<8x32xf32>
      %62 = arith.addf %60, %61 : vector<8x32xf32>
      %63 = arith.truncf %62 : vector<8x32xf32> to vector<8x32xbf16>
      %c0_38 = arith.constant 0 : index
      %c0_39 = arith.constant 0 : index
      %64 = vector.load %arg11[%c0_38, %c0_39] : memref<8x32xbf16, #tpu.memory_space<vmem>>, vector<8x32xbf16>
      tpu.vector_store %arg11[%c0_38, %c0_39], %63 {strides = array<i32>} : memref<8x32xbf16, #tpu.memory_space<vmem>>, vector<8x32xbf16>,
      %cst_40 = arith.constant 0.000000e+00 : f32
      %65 = vector.broadcast %cst_40 : f32 to vector<8x32xf32>
      %c0_41 = arith.constant 0 : index
      %c0_42 = arith.constant 0 : index
      %66 = vector.load %arg12[%c0_41, %c0_42] : memref<8x32xf32, #tpu.memory_space<vmem>>, vector<8x32xf32>
      tpu.vector_store %arg12[%c0_41, %c0_42], %65 {strides = array<i32>} : memref<8x32xf32, #tpu.memory_space<vmem>>, vector<8x32xf32>,
    } else {
    }
    %c0 = arith.constant 0 : index
    %c0_1 = arith.constant 0 : index
    %3 = vector.load %arg11[%c0, %c0_1] : memref<8x32xbf16, #tpu.memory_space<vmem>>, vector<8x32xbf16>
    %c0_2 = arith.constant 0 : index
    %c0_3 = arith.constant 0 : index
    %c0_4 = arith.constant 0 : index
    %4 = vector.load %arg5[%c0_2, %c0_3, %c0_4] : memref<1x32x16xbf16, #tpu.memory_space<vmem>>, vector<1x32x16xbf16>
    %5 = vector.shape_cast %4 : vector<1x32x16xbf16> to vector<32x16xbf16>
    %cst = arith.constant dense<0.000000e+00> : vector<8x16xf32>
    %6 = tpu.matmul %3, %5, %cst {dimension_numbers = #tpu.dot_dimension_numbers<[1], [0], [0], [1], [0, 0, 1, 1], [], []>} : vector<8x32xbf16>, vector<32x16xbf16>, vector<8x16xf32> -> vector<8x16xf32>
    %c0_5 = arith.constant 0 : index
    %c0_6 = arith.constant 0 : index
    %c0_7 = arith.constant 0 : index
    %7 = vector.load %arg6[%c0_5, %c0_6, %c0_7] : memref<1x32x16xbf16, #tpu.memory_space<vmem>>, vector<1x32x16xbf16>
    %8 = vector.shape_cast %7 : vector<1x32x16xbf16> to vector<32x16xbf16>
    %cst_8 = arith.constant dense<0.000000e+00> : vector<8x16xf32>
    %9 = tpu.matmul %3, %8, %cst_8 {dimension_numbers = #tpu.dot_dimension_numbers<[1], [0], [0], [1], [0, 0, 1, 1], [], []>} : vector<8x32xbf16>, vector<32x16xbf16>, vector<8x16xf32> -> vector<8x16xf32>
    %c0_9 = arith.constant 0 : index
    %c0_10 = arith.constant 0 : index
    %c0_11 = arith.constant 0 : index
    %10 = vector.load %arg7[%c0_9, %c0_10, %c0_11] : memref<1x32x16xbf16, #tpu.memory_space<vmem>>, vector<1x32x16xbf16>
    %11 = vector.shape_cast %10 : vector<1x32x16xbf16> to vector<32x16xbf16>
    %cst_12 = arith.constant dense<0.000000e+00> : vector<8x16xf32>
    %12 = tpu.matmul %3, %11, %cst_12 {dimension_numbers = #tpu.dot_dimension_numbers<[1], [0], [0], [1], [0, 0, 1, 1], [], []>} : vector<8x32xbf16>, vector<32x16xbf16>, vector<8x16xf32> -> vector<8x16xf32>
    %cst_13 = arith.constant dense<0.000000e+00> : vector<8x8xf32>
    %13 = tpu.matmul %6, %9, %cst_13 {dimension_numbers = #tpu.dot_dimension_numbers<[1], [1], [0], [0], [0, 0, 1, 0], [], []>} : vector<8x16xf32>, vector<8x16xf32>, vector<8x8xf32> -> vector<8x8xf32>
    %cst_14 = arith.constant dense<0xFF800000> : vector<8xf32>
    %14 = vector.multi_reduction <maximumf>, %13, %cst_14 [1] : vector<8x8xf32> to vector<8xf32>
    %15 = vector.shape_cast %14 : vector<8xf32> to vector<8x1xf32>
    %16 = vector.broadcast %15 : vector<8x1xf32> to vector<8x8xf32>
    %17 = arith.subf %13, %16 : vector<8x8xf32>
    %18 = math.exp %17 : vector<8x8xf32>
    %cst_15 = arith.constant dense<0.000000e+00> : vector<8xf32>
    %19 = vector.multi_reduction <add>, %18, %cst_15 [1] : vector<8x8xf32> to vector<8xf32>
    %20 = vector.shape_cast %19 : vector<8xf32> to vector<8x1xf32>
    %21 = tpu.reciprocal %20 {approx = true} : vector<8x1xf32> -> vector<8x1xf32>
    %22 = vector.broadcast %21 : vector<8x1xf32> to vector<8x8xf32>
    %23 = arith.mulf %18, %22 : vector<8x8xf32>
    %24 = arith.truncf %23 : vector<8x8xf32> to vector<8x8xbf16>
    %25 = arith.truncf %12 : vector<8x16xf32> to vector<8x16xbf16>
    %cst_16 = arith.constant dense<0.000000e+00> : vector<8x16xf32>
    %26 = tpu.matmul %24, %25, %cst_16 {dimension_numbers = #tpu.dot_dimension_numbers<[1], [0], [0], [1], [0, 0, 1, 1], [], []>} : vector<8x8xbf16>, vector<8x16xbf16>, vector<8x16xf32> -> vector<8x16xf32>
    %c0_17 = arith.constant 0 : index
    %c0_18 = arith.constant 0 : index
    %27 = vector.load %arg12[%c0_17, %c0_18] : memref<8x32xf32, #tpu.memory_space<vmem>>, vector<8x32xf32>
    %28 = arith.truncf %26 : vector<8x16xf32> to vector<8x16xbf16>
    %c0_19 = arith.constant 0 : index
    %c0_20 = arith.constant 0 : index
    %c0_21 = arith.constant 0 : index
    %29 = vector.load %arg8[%c0_19, %c0_20, %c0_21] : memref<1x16x32xbf16, #tpu.memory_space<vmem>>, vector<1x16x32xbf16>
    %30 = vector.shape_cast %29 : vector<1x16x32xbf16> to vector<16x32xbf16>
    %cst_22 = arith.constant dense<0.000000e+00> : vector<8x32xf32>
    %31 = tpu.matmul %28, %30, %cst_22 {dimension_numbers = #tpu.dot_dimension_numbers<[1], [0], [0], [1], [0, 0, 1, 1], [], []>} : vector<8x16xbf16>, vector<16x32xbf16>, vector<8x32xf32> -> vector<8x32xf32>
    %32 = arith.addf %27, %31 : vector<8x32xf32>
    %c0_23 = arith.constant 0 : index
    %c0_24 = arith.constant 0 : index
    %33 = vector.load %arg12[%c0_23, %c0_24] : memref<8x32xf32, #tpu.memory_space<vmem>>, vector<8x32xf32>
    tpu.vector_store %arg12[%c0_23, %c0_24], %32 {strides = array<i32>} : memref<8x32xf32, #tpu.memory_space<vmem>>, vector<8x32xf32>,
    %c3_i32 = arith.constant 3 : i32
    %34 = arith.cmpi eq, %arg1, %c3_i32 : i32
    %35 = arith.extui %34 : i1 to i32
    %c0_i32_25 = arith.constant 0 : i32
    %36 = arith.cmpi ne, %35, %c0_i32_25 : i32
    scf.if %36 {
      %c0_26 = arith.constant 0 : index
      %c0_27 = arith.constant 0 : index
      %37 = vector.load %arg12[%c0_26, %c0_27] : memref<8x32xf32, #tpu.memory_space<vmem>>, vector<8x32xf32>
      %c0_28 = arith.constant 0 : index
      %c0_29 = arith.constant 0 : index
      %38 = vector.load %arg9[%c0_28, %c0_29] : memref<1x32xf32, #tpu.memory_space<vmem>>, vector<1x32xf32>
      %39 = vector.broadcast %38 : vector<1x32xf32> to vector<8x32xf32>
      %40 = arith.addf %37, %39 : vector<8x32xf32>
      %c0_30 = arith.constant 0 : index
      %c0_31 = arith.constant 0 : index
      %c0_32 = arith.constant 0 : index
      %41 = vector.load %arg10[%c0_30, %c0_31, %c0_32] : memref<1x8x32xf32, #tpu.memory_space<vmem>>, vector<1x8x32xf32>
      %42 = vector.shape_cast %41 : vector<1x8x32xf32> to vector<8x32xf32>
      %43 = vector.shape_cast %40 : vector<8x32xf32> to vector<1x8x32xf32>
      tpu.vector_store %arg10[%c0_30, %c0_31, %c0_32], %43 {strides = array<i32>} : memref<1x8x32xf32, #tpu.memory_space<vmem>>, vector<1x8x32xf32>,
    } else {
    }
    return
  }
  func.func @transform_0(%arg0: i32, %arg1: i32) -> (i32, i32, i32) {
    %c0_i32 = arith.constant 0 : i32
    %c0_i32_0 = arith.constant 0 : i32
    %c0_i32_1 = arith.constant 0 : i32
    return %arg0, %c0_i32, %c0_i32_0 : i32, i32, i32
  }
  func.func @transform_1(%arg0: i32, %arg1: i32) -> (i32, i32) {
    %c0_i32 = arith.constant 0 : i32
    %c0_i32_0 = arith.constant 0 : i32
    %c0_i32_1 = arith.constant 0 : i32
    return %c0_i32, %c0_i32_0 : i32, i32
  }
  func.func @transform_2(%arg0: i32, %arg1: i32) -> (i32, i32) {
    %c0_i32 = arith.constant 0 : i32
    %c0_i32_0 = arith.constant 0 : i32
    %c0_i32_1 = arith.constant 0 : i32
    return %c0_i32, %c0_i32_0 : i32, i32
  }
  func.func @transform_3(%arg0: i32, %arg1: i32) -> (i32, i32, i32) {
    %c0_i32 = arith.constant 0 : i32
    %c0_i32_0 = arith.constant 0 : i32
    %c0_i32_1 = arith.constant 0 : i32
    return %arg1, %c0_i32, %c0_i32_0 : i32, i32, i32
  }
  func.func @transform_4(%arg0: i32, %arg1: i32) -> (i32, i32, i32) {
    %c0_i32 = arith.constant 0 : i32
    %c0_i32_0 = arith.constant 0 : i32
    %c0_i32_1 = arith.constant 0 : i32
    return %arg1, %c0_i32, %c0_i32_0 : i32, i32, i32
  }
  func.func @transform_5(%arg0: i32, %arg1: i32) -> (i32, i32, i32) {
    %c0_i32 = arith.constant 0 : i32
    %c0_i32_0 = arith.constant 0 : i32
    %c0_i32_1 = arith.constant 0 : i32
    return %arg1, %c0_i32, %c0_i32_0 : i32, i32, i32
  }
  func.func @transform_6(%arg0: i32, %arg1: i32) -> (i32, i32, i32) {
    %c0_i32 = arith.constant 0 : i32
    %c0_i32_0 = arith.constant 0 : i32
    %c0_i32_1 = arith.constant 0 : i32
    return %arg1, %c0_i32, %c0_i32_0 : i32, i32, i32
  }
  func.func @transform_7(%arg0: i32, %arg1: i32) -> (i32, i32) {
    %c0_i32 = arith.constant 0 : i32
    %c0_i32_0 = arith.constant 0 : i32
    %c0_i32_1 = arith.constant 0 : i32
    return %c0_i32, %c0_i32_0 : i32, i32
  }
  func.func @transform_8(%arg0: i32, %arg1: i32) -> (i32, i32, i32) {
    %c0_i32 = arith.constant 0 : i32
    %c0_i32_0 = arith.constant 0 : i32
    %c0_i32_1 = arith.constant 0 : i32
    return %arg0, %c0_i32, %c0_i32_0 : i32, i32, i32
  }
}

</mosaic_0001>

<bundles_post_ra>
// kernel: attention_forward.1
= control target key start
LH: loop header
LB: loop body
LE: loop exit
PB: predicated region body
PF: predicated region fallthrough
CT: control target
= control target key end

     0   :  { %13 = vsyncpa [#allocation5], 0  ;;  %s1470_s0 = inlined_call_operand.vmem [shape: f32[2,8,32], index: 0, kind: input, shape index: {}]   ;;  %s1471_s1 = inlined_call_operand.vmem [shape: f32[1,32], index: 1, kind: input, shape index: {}]   ;;  %s1472_s2 = inlined_call_operand.vmem [shape: f32[1,32], index: 2, kind: input, shape index: {}]   ;;  %s1473_s3 = inlined_call_operand.vmem [shape: bf16[4,32,16], index: 3, kind: input, shape index: {}]   ;;  %s1474_s4 = inlined_call_operand.vmem [shape: bf16[4,32,16], index: 4, kind: input, shape index: {}]   ;;  %s1475_s5 = inlined_call_operand.vmem [shape: bf16[4,32,16], index: 5, kind: input, shape index: {}]   ;;  %s1476_s6 = inlined_call_operand.vmem [shape: bf16[4,16,32], index: 6, kind: input, shape index: {}]   ;;  %s1477_s7 = inlined_call_operand.vmem [shape: f32[1,32], index: 7, kind: input, shape index: {}]   ;;  %s1478_s8 = inlined_call_operand.hbm [shape: f32[2,8,32], index: 8, kind: output, shape index: {}]  }
   0x1   :  { %15 = vsyncpa [#allocation5 + $0x1], 0  ;;  %s1276_s27 = smov 0   ;;  %s1278_s28 = smov 0  }
   0x2   :  { %s1280_s29 = smov 0   ;;  %s1282_s30 = smov 0  }
   0x3   :  { %s1284_s9 = smov 0   ;;  %s1286_s10 = smov 0  }
   0x4   :  { %s1288_s11 = smov 0   ;;  %s1290_s12 = smov 0  }
   0x5 LB: > { %1488 = sst [smem:[#allocation7_spill]] %s1197_s27  ;;  %s946_s13 = sadd.s32 4294967295, %s1225_s12   ;;  %s1225_s12 = sphi %s1290_s12, %s21_s12   ;;  %s1221_s11 = sphi %s1288_s11, %s1508_s11   ;;  %s1217_s10 = sphi %s1286_s10, %s1507_s10   ;;  %s1213_s9 = sphi %s1284_s9, %s1506_s9   ;;  %s1209_s30 = sphi %s1282_s30, %s1505_s30   ;;  %s1205_s29 = sphi %s1280_s29, %s1504_s29   ;;  %s1201_s28 = sphi %s1278_s28, %s1510_s28   ;;  %s1197_s27 = sphi %s1276_s27, %s1509_s27  }
   0x6   : > { %1489 = sst [smem:[#allocation8_spill]] %s1205_s29  ;;  %s947_s14 = sadd.s32 4294967294, %s1225_s12  }
   0x7   : > { %1490 = sst [smem:[#allocation9_spill]] %s1217_s10  ;;  %s30_s15 = sadd.s32 1, %s1217_s10 }
   0x8   : > { %1491 = sst [smem:[#allocation10_spill]] %s1221_s11  ;;  %p31_p0 = scmp.ge.s32.totalorder %s30_s15, 4 }
   0x9   : > { %1492 = sst [smem:[#allocation11_spill]] %s1225_s12  ;;  %s33_s16 = sadd.s32 1, %s1221_s11 }
   0xa   : > { %p243_p1 = scmp.ne.s32.totalorder %s1205_s29, %s1201_s28  ;;  %p244_p2 = scmp.eq.s32.totalorder %s946_s13, 7 }
   0xb   : > { %s1512_s15 = smov (%p31_p0, %s30_s15), 0  ;;  %s1514_s16 = smov (!%p31_p0, %s33_s16), %s1221_s11 }
   0xc   : > { %1493 = sst [smem:[#allocation12_spill]] %s1512_s15  ;;  %p1325_p3 = por %p244_p2, %p243_p1 }
   0xd   : > { %p249_p4 = scmp.ne.s32.totalorder %s1201_s28, %s1197_s27  ;;  %p35_p5 = scmp.ge.s32.totalorder %s1514_s16, 2 }
   0xe   : > { %p250_p6 = scmp.eq.s32.totalorder %s947_s14, 7  ;;  %p950_p7 = scmp.ge.s32.totalorder %s1225_s12, 1 }
   0xf   : > { %p316_p8 = scmp.lt.s32.totalorder %s1225_s12, 9  ;;  %s1516_s16 = smov (%p35_p5, %s1514_s16), 0 }
  0x10   : > { %1495 = sst [smem:[#allocation13_spill]] %s1516_s16  ;;  %p1335_p9 = por %p250_p6, %p249_p4 }
  0x11   : > { %p317_p10 = pnand %p950_p7, %p316_p8  ;;  %s230_s19 = ssub.s32 %s1221_s11, %s1516_s16 }
  0x12   : > { %s1496_s18 = scalar_select %p1335_p9, 1, 0 }
  0x13   : > { %s233_s20 = sadd.s32 1, %s1205_s29  ;;  %p231_p11 = scmp.eq.s32.totalorder %s230_s19, 0 }
  0x14   : > { %1497 = sst [smem:[#allocation14_spill]] %s1496_s18  ;;  %320 = sbr.rel (%p317_p10) target bundleno = 1564 (0x61c), region = 52 }
  0x15   : > { %s1343_s21 = scalar_select %p231_p11, %s1205_s29, %s233_s20  }
  0x16   : > { %s1482_s22 = sand.u32 (!%p317_p10), 1, %s1201_s28   ;;  %p369_p12 = scmp.lt.s32.totalorder (!%p317_p10), %s1213_s9, 1 }
  0x17   : > { %1498 = sst [smem:[#allocation15_spill]] %s1343_s21  ;;  %s1349_s23 = sshll.u32 (!%p317_p10), %s1482_s22, 3 }
  0x18   : > { %p373_p13 = scmp.lt.s32.totalorder (!%p317_p10), %s1209_s30, 3  ;;  %s368_s14 = scalar_lea.vmem (!%p317_p10), [#allocation4], %s1349_s23 }
  0x19   : > { %p961_p0 = scmp.ne.s32.totalorder (!%p317_p10), %s1209_s30, 0 }
  0x1b   : > { %s370_s24 = scalar_select %p369_p12, %s1213_s9, 1 }
  0x1c   : > { %s374_s25 = scalar_select %p373_p13, %s1209_s30, 3 }
  0x1d   : > { %s952_s26 = sshll.u32 %s370_s24, 3  ;;  %397 = sbr.rel (%p961_p0) target bundleno = 348 (0x15c), region = 56  ;;  %vm401_vm0 = vcmask (!%p961_p0), 261120   ;;  %v1227_v2 = vmov (!%p961_p0), 0.0   ;;  %v962_v12 = vld [vmem:[%s1471_s1] ss:$0 sm:$0xff] (!%p961_p0) }
  0x1e   : > { %s372_s19 = scalar_lea.vmem %s1470_s0, %s952_s26  ;;  %s984_s20 = sshll.u32 %s374_s25, 4  ;;  %433 = vst.msk [vmem:[#allocation3] sm:$0xff] (!%p961_p0), %vm401_vm0, %v1227_v2  ;;  %v963_v14 = vld [vmem:[%s1472_s2] ss:$0 sm:$0xff] (!%p961_p0)  ;;  %vm431_vm1 = vcmask (!%p961_p0), 257024  }
  0x1f   : > { %s1360_s11 = scalar_lea.vmem %s1473_s3, %s984_s20  ;;  %s1365_s22 = scalar_lea.vmem %s1474_s4, %s984_s20  ;;  %v398_v0 = vld [vmem:[%s372_s19] sm:$0xff] (!%p961_p0) }
  0x20   : > { %s1370_s27 = scalar_lea.vmem %s1475_s5, %s984_s20  ;;  %s987_s24 = sshll.u32 %s374_s25, 3  ;;  %v402_v1 = vsel (!%p961_p0), %vm401_vm0, %v398_v0, 0.0 }
  0x21   : > { %s1375_s26 = scalar_lea.vmem %s1476_s6, %s987_s24  ;;  %403 = vadd.xlane.f32.xlu0 (!%p961_p0), %v402_v1 }
  0xae   : > { %v404_v3 = vpop.xlane.xlu0 %403 }
  0xaf   : > { %v406_v4 = vmul.f32 0.03125, %v404_v3 }
  0xb1   : > { %v407_v5 = vsub.f32 %v398_v0, %v406_v4 }
  0xb3   : > { %v408_v6 = vmul.f32 %v407_v5, %v407_v5 }
  0xb5   : > { %v409_v7 = vsel %vm401_vm0, %v408_v6, 0.0 }
  0xb6   : > { %410 = vadd.xlane.f32.xlu0 %v409_v7 }
 0x143   : > { %v411_v8 = vpop.xlane.xlu0 %410 }
 0x144   : > { %v412_v9 = vmul.f32 0.03125, %v411_v8 }
 0x146   : > { %v413_v10 = vadd.f32 1e-05, %v412_v9 }
 0x148   : > { %1118 = vrsqrt.f32 %v413_v10 }
 0x152   : > { %v1119_v11 = vpop.eup %1118 }
 0x153   : > { %v415_v13 = vmul.f32 %v1119_v11, %v407_v5 }
 0x155   : > { %v422_v15 = vmul.f32 %v962_v12, %v415_v13 }
 0x157   : > { %v429_v16 = vadd.f32 %v963_v14, %v422_v15 }
 0x159   : > { %v430_v17 = vpack.c.bf16 %v429_v16, %v429_v16 }
 0x15b   : > { %432 = vst.msk [vmem:[#allocation2] sm:$0xf] %vm431_vm1, %v430_v17 }
 0x15c PF: > { %v1120_v18 = vld [vmem:[%s1365_s22] sm:$0xff]   ;;  %v1228_v19 = vmov 0.0   ;;  %v1122_v21 = vld [vmem:[%s1365_s22 + $0x8] sm:$0xff]   ;;  %vm1229_vm2 = vmmov 0   ;;  %vm451_vm3 = vcmask 261120   ;;  %vm607_vm4 = vcmask 130048  }
 0x15d   : > { %1011 = vmatprep.subr.bf16.mxu1 %v1228_v19  ;;  %1003 = vmatprep.subr.bf16.mxu0 %v1228_v19  ;;  %v1121_v20 = vld [vmem:[%s1360_s11] sm:$0xff]   ;;  %v1123_v22 = vld [vmem:[%s1360_s11 + $0x8] sm:$0xff]   ;;  %vm684_vm5 = vcmask 64512   ;;  %vm701_vm6 = vcmask 1043456   ;;  %p978_p1 = scmp.ne.s32.totalorder %s1209_s30, 3 }
 0x15e   : > { %1012 = vmatpush3.bf16.msra.mxu1 %v1120_v18  ;;  %1015 = vmatprep.mubr.msk.bf16.mxu1 %vm1229_vm2, %v1228_v19  ;;  %v1124_v32 = vld [vmem:[%s1370_s27] sm:$0xff]   ;;  %v1125_v33 = vld [vmem:[%s1370_s27 + $0x8] sm:$0xff]  }
 0x15f   : > { %1004 = vmatpush3.bf16.msra.mxu0 %v1121_v20  ;;  %1013 = vmatprep.subr.bf16.mxu1 %v1228_v19  ;;  %v1126_v52 = vld [vmem:[%s1375_s26] sm:$0xff]  }
 0x160   : > { %1005 = vmatprep.subr.bf16.mxu0 %v1228_v19  ;;  %1007 = vmatprep.mubr.msk.bf16.mxu0 %vm1229_vm2, %v1228_v19  ;;  %v745_v58 = vld [vmem:[#allocation3] sm:$0xff]  ;;  %v979_v1 = vld [vmem:[%s1477_s7] ss:$0 sm:$0xff] (!%p978_p1) }
 0x162   : > { %1014 = vmatpush3.bf16.msra.mxu1 %v1122_v21  ;;  %v434_v23 = vld [vmem:[#allocation2] sm:$0xf] }
 0x163   : > { %1006 = vmatpush3.bf16.msra.mxu0 %v1123_v22  ;;  %1027 = vmatprep.subr.mxu1 %v1228_v19 }
 0x164   : > { %1019 = vmatprep.subr.bf16.mxu0 %v1228_v19 }
 0x165   : > { %1016 = vmatmul.mubr.msk.bf16.vlgmr.msra.gmra.mrb[0].mxu1 %vm451_vm3, %v434_v23 }
 0x166   : > { %1008 = vmatmul.mubr.msk.bf16.vlgmr.msra.gmra.mrb[0].mxu0 %vm451_vm3, %v434_v23  ;;  %1029 = vmatprep.mubr.msk.f32.mxu1 %vm1229_vm2, %v1228_v19 }
 0x167   : > { %1023 = vmatprep.mubr.msk.bf16.mxu0 %vm1229_vm2, %v1228_v19  ;;  %1020 = vmatpush3.bf16.msra.mxu0 %v1124_v32 }
 0x168   : > { %1021 = vmatprep.subr.bf16.mxu0 %v1228_v19 }
 0x16b   : > { %1022 = vmatpush3.bf16.msra.mxu0 %v1125_v33 }
 0x16c   : > { %1038 = vmatprep.subr.bf16.mxu0 %v1228_v19 }
 0x16e   : > { %1024 = vmatmul.mubr.msk.bf16.vlgmr.msra.gmra.mrb[4].mxu0 %vm451_vm3, %v434_v23 }
 0x16f   : > { %1040 = vmatprep.mubr.msk.bf16.mxu0 %vm1229_vm2, %v1228_v19  ;;  %1039 = vmatpush3.bf16.msra.mxu0 %v1126_v52 }
 0x238   : > { %v545_v24 = vpop.f32.mrb[0].mxu1 }
 0x239   : > { %v1017_v25 = vpop.f32.mrb[1].mxu1  ;;  %1028 = vmatpush3.xpose.msk.msra.mxu1 %vm607_vm4, %v545_v24  ;;  %v489_v26 = vpop.f32.mrb[0].mxu0 }
 0x23a   : > { %v548_v27 = vpop.f32.mrb[2].mxu1  ;;  %v1009_v28 = vpop.f32.mrb[1].mxu0  ;;  %1032 = vmatprep.subr.bf16.mxu1 %v1228_v19 }
 0x23b   : > { %v1018_v29 = vpop.f32.mrb[3].mxu1  ;;  %v492_v30 = vpop.f32.mrb[2].mxu0 }
 0x23c   : > { %1030 = vmatmul.mubr.msk.f32.vlgmr.msra.gmra.mrb[4].mxu1 %vm607_vm4, %v489_v26  ;;  %v1010_v31 = vpop.f32.mrb[3].mxu0 }
 0x23d   : > { %1034 = vmatprep.mubr.msk.bf16.mxu1 %vm1229_vm2, %v1228_v19 }
 0x241   : > { %v601_v42 = vpop.f32.mrb[4].mxu0 }
 0x242   : > { %v1025_v43 = vpop.f32.mrb[5].mxu0  ;;  %v697_v46 = vpack.c.bf16 %v601_v42, %v601_v42 }
 0x243   : > { %v604_v44 = vpop.f32.mrb[6].mxu0 }
 0x244   : > { %v1026_v45 = vpop.f32.mrb[7].mxu0  ;;  %v703_v47 = vsel %vm701_vm6, %v697_v46, 0 }
 0x245   : > { %1033 = vmatpush3.bf16.msra.mxu1 %v703_v47 }
 0x30f   : > { %v680_v34 = vpop.f32.mrb[4].mxu1 }
 0x310   : > { %v685_v35 = vsel %vm684_vm5, %v680_v34, -inf  ;;  %v1031_v36 = vpop.f32.mrb[5].mxu1 }
 0x311   : > { %686 = vmax.xlane.f32.xlu0 %v685_v35 }
 0x39e   : > { %v687_v37 = vpop.xlane.xlu0 %686 }
 0x39f   : > { %v688_v38 = vsub.f32 %v680_v34, %v687_v37 }
 0x3a1   : > { %v689_v39 = vmul.f32 1.442695, %v688_v38 }
 0x3a3   : > { %1127 = vpow2.f32 %v689_v39 }
 0x3ad   : > { %v1128_v40 = vpop.eup %1127 }
 0x3ae   : > { %v691_v41 = vsel %vm684_vm5, %v1128_v40, 0.0 }
 0x3af   : > { %692 = vadd.xlane.f32.xlu0 %v691_v41 }
 0x43c   : > { %v693_v48 = vpop.xlane.xlu0 %692 }
 0x43d   : > { %1129 = vrcp.f32 %v693_v48 }
 0x447   : > { %v1130_v49 = vpop.eup %1129 }
 0x448   : > { %v695_v50 = vmul.f32 %v1130_v49, %v1128_v40 }
 0x44a   : > { %v696_v51 = vpack.c.bf16 %v695_v50, %v695_v50 }
 0x44c   : > { %1035 = vmatmul.mubr.msk.bf16.vlgmr.msra.gmra.mrb[8].mxu1 %vm684_vm5, %v696_v51 }
 0x51f   : > { %v739_v53 = vpop.f32.mrb[8].mxu1 }
 0x520   : > { %v746_v54 = vpack.c.bf16 %v739_v53, %v739_v53  ;;  %v1036_v55 = vpop.f32.mrb[9].mxu1 }
 0x521   : > { %v742_v56 = vpop.f32.mrb[10].mxu1 }
 0x522   : > { %v1037_v57 = vpop.f32.mrb[11].mxu1  ;;  %1041 = vmatmul.mubr.msk.bf16.vlgmr.msra.gmra.mrb[8].mxu0 %vm607_vm4, %v746_v54 }
 0x5f2   : > { %803 = sbr.rel (%p978_p1) target bundleno = 1539 (0x603), region = 60 }
 0x5f5   : > { %v792_v59 = vpop.f32.mrb[8].mxu0 }
 0x5f6   : > { %v798_v60 = vadd.f32 %v792_v59, %v745_v58  ;;  %v1042_v61 = vpop.f32.mrb[9].mxu0 }
 0x5f7   : > { %v795_v62 = vpop.f32.mrb[10].mxu0 }
 0x5f8   : > { %799 = vst.msk [vmem:[#allocation3] sm:$0xff] %vm451_vm3, %v798_v60  ;;  %v1043_v63 = vpop.f32.mrb[11].mxu0 }
 0x5ff   : > { %v804_v0 = vld [vmem:[#allocation3] sm:$0xff] }
 0x600   : > { %v812_v2 = vadd.f32 %v979_v1, %v804_v0 }
 0x602   : > { %813 = vst.msk [vmem:[%s368_s14] sm:$0xff] %vm451_vm3, %v812_v2 }
 0x603 PF: > { %s981_s16 = sshll.u32 %s1213_s9, 7  ;;  %s828_s22 = sshll.u32 %s368_s14, 4  ;;  %s829_s22 = int_to_ptr.vmem [resolvable:$true] %s828_s22 }
 0x604   : > { %s1419_s30 = scalar_lea.hbm %s1478_s8, %s981_s16  ;;  %s1499_s25 = sand.u32 1, %s1201_s28  }
 0x605   : > { %s815_s19 = scalar_lea.sflag [#allocation5], %s1499_s25  ;;  %s1131_s20 = scalar_lea.vmem %s829_s22, 128 }
 0x606   : > { %p1132_p2 = scmp.ne.s32.totalorder %s829_s22, %s1131_s20  ;;  %s1230_s24 = smov [#allocation4]  }
 0x607   : > { %s1135_s13 = sshll.u32 %s1230_s24, 4  ;;  %s1136_s13 = int_to_ptr.vmem [resolvable:$false] %s1135_s13 }
 0x608   : > { %p1133_p4 = pnand %p1132_p2, %p1325_p3  ;;  %s1137_s26 = scalar_lea.vmem %s1136_s13, 256 }
 0x609   : > { %p1138_p6 = scmp.lt.s32.totalorder %s829_s22, %s1136_s13  ;;  %p1139_p7 = scmp.lt.s32.totalorder %s1137_s26, %s1131_s20 }
 0x60a   : > { %p1134_p5 = pneg %p1133_p4 }
 0x60b   : > { %p1140_p8 = por %p1139_p7, %p1138_p6 }
 0x60d   : > { %p1141_p10 = pnand %p1140_p8, %p1134_p5 }
 0x60f   : > { %1144 = shalt.err (!%p1141_p10)
}
 0x610   : > { %s1145_s9 = scalar_lea.hbm %s1419_s30, 128  ;;  %s1149_s29 = scalar_lea.hbm %s1478_s8, 256 }
 0x611   : > { %p1146_p11 = scmp.ne.s32.totalorder %s1419_s30, %s1145_s9  ;;  %p1150_p0 = scmp.lt.u32.totalorder %s1419_s30, %s1478_s8 }
 0x612   : > { %p1151_p1 = scmp.lt.u32.totalorder %s1149_s29, %s1145_s9  ;;  %p1153_p4 = scmp.lt.u32.totalorder %s1145_s9, %s1419_s30 }
 0x613   : > { %p1147_p12 = pnand %p1146_p11, %p1325_p3 }
 0x614   : > { %p1152_p2 = por %p1151_p1, %p1150_p0 }
 0x615   : > { %p1148_p13 = pneg %p1147_p12 }
 0x616   : > { %p1154_p5 = por %p1153_p4, %p1152_p2 }
 0x618   : > { %p1155_p6 = pnand %p1154_p5, %p1148_p13 }
 0x61a   : > { %1158 = shalt.err (!%p1155_p6)
}
 0x61b   : > { %1044 = dma.vmem_to_hbm [thread:$0]  (%p1325_p3), %s829_s22, 128, %s1419_s30, %s815_s19  }
 0x61c PF: > { %s1500_s15 = sld [smem:[#allocation11_spill]]  ;;  %s1501_s27 = sld [smem:[#allocation7_spill]] }
 0x622   : > { %p1050_p7 = scmp.ge.s32.totalorder %s1500_s15, 2  ;;  %s840_s16 = sand.u32 1, %s1501_s27  }
 0x623   : > { %s841_s18 = scalar_lea.sflag [#allocation5], %s840_s16 }
 0x624   : > { %p1047_p8 = pnand %p1050_p7, %p1335_p9 }
 0x626   : > { %1192 = dma.done.wait (!%p1047_p8), %s841_s18, 128  }
 0x627   : > { %1194 = vsyncadd (!%p1047_p8), %s841_s18, 4294967168  ;;  %s21_s12 = sadd.s32 1, %s1500_s15   ;;  %s1503_s21 = sld [smem:[#allocation8_spill]] }
 0x628   : > { %p18_p10 = scmp.ge.s32.totalorder %s21_s12, 10   ;;  %s1504_s29 = sld [smem:[#allocation15_spill]] }
 0x629   : > { %s1505_s30 = sld [smem:[#allocation9_spill]]  ;;  %s1506_s9 = sld [smem:[#allocation10_spill]] }
 0x62a   : > { %s1507_s10 = sld [smem:[#allocation12_spill]]  ;;  %s1508_s11 = sld [smem:[#allocation13_spill]] }
 0x62b   : > { %s1509_s27 = smov %s1201_s28  ;;  %20 = sbr.rel (!%p18_p10) target bundleno = 5 (0x5), region = 107 }
 0x62d   : > { %s1510_s28 = smov %s1503_s21 }
 0x632   :  { %846 = vsyncpa [#allocation5], 1 }
 0x633   :  { %848 = vsyncpa [#allocation5 + $0x1], 1 }

</bundles_post_ra>
